<compile_context>
chip_gen: v7x
topology: tpu7x:2x2x1
jax: 0.10.0
libtpu: 0.0.40
codegen_flags: <defaults>
</compile_context>

<pallas_src>
import functools

import jax
import jax.numpy as jnp
from jax.experimental import pallas as pl
from jax.experimental.pallas import tpu as pltpu

LANE = 128
SUBLANE = 8


def _round_up(n, m):
    return ((n + m - 1) // m) * m


def _mlp_kernel(num_linear, x_ref, *refs):
    """Fused MLP: all linear layers + activations, one batch tile per step.

    refs = (w0, b0, w1, b1, ..., w_{L-1}, b_{L-1}, out_ref)
    """
    out_ref = refs[-1]
    param_refs = refs[:-1]
    h = x_ref[...]                       # already float32, no cast needed
    for i in range(num_linear):
        w = param_refs[2 * i][...]
        b = param_refs[2 * i + 1][...]
        h = jnp.dot(h, w, preferred_element_type=jnp.float32) + b
        if i == 0:
            h = jnp.tanh(h)              # input layer -> tanh
        elif i < num_linear - 1:
            h = jnp.maximum(h, 0.0)      # hidden layers -> relu
        # output layer: no activation
    out_ref[...] = h


def dnn_forward_pallas(x, weights, biases, *, batch_tile=256):
    """DNN forward as one fused, batch-tiled Pallas TPU kernel.

    x:        (batch, input_size) float32
    weights:  list of (in_i, out_i) float32  (transposed vs torch Linear)
    biases:   list of (out_i,) float32
    """
    num_linear = len(weights)
    batch, in_features = x.shape
    out_features = weights[-1].shape[1]

    # Feature dims padded to lane width (128) -> dense vregs, unmasked stores.
    dims = [in_features] + [w.shape[1] for w in weights]
    pdims = [_round_up(d, LANE) for d in dims]

    # Batch tile: multiple of the 8-row sublane; pad batch up to a whole
    # number of tiles so every grid step sees a full block.
    bt = min(batch_tile, _round_up(batch, SUBLANE))
    bt = max(SUBLANE, _round_up(bt, SUBLANE))
    pbatch = _round_up(batch, bt)

    xp = jnp.pad(x.astype(jnp.float32),
                 ((0, pbatch - batch), (0, pdims[0] - in_features)))

    operands = [xp]
    in_specs = [pl.BlockSpec((bt, pdims[0]), lambda i: (i, 0))]
    for li, (w, b) in enumerate(zip(weights, biases)):
        k, n = w.shape
        wp = jnp.pad(w.astype(jnp.float32),
                     ((0, pdims[li] - k), (0, pdims[li + 1] - n)))
        bp = jnp.pad(b.astype(jnp.float32),
                     (0, pdims[li + 1] - n)).reshape(1, -1)
        operands.append(wp)
        operands.append(bp)
        # Constant index_map -> weights/biases stay VMEM-resident across steps.
        in_specs.append(pl.BlockSpec(wp.shape, lambda i: (0, 0)))
        in_specs.append(pl.BlockSpec(bp.shape, lambda i: (0, 0)))

    out_spec = pl.BlockSpec((bt, pdims[-1]), lambda i: (i, 0))

    kernel = functools.partial(_mlp_kernel, num_linear)
    out_padded = pl.pallas_call(
        kernel,
        out_shape=jax.ShapeDtypeStruct((pbatch, pdims[-1]), jnp.float32),
        grid=(pbatch // bt,),
        in_specs=in_specs,
        out_specs=out_spec,
        compiler_params=pltpu.CompilerParams(
            # Batch tiles are independent -> pipeline + split across TCs (v7x).
            dimension_semantics=("parallel",),
        ),
    )(*operands)

    # Slice off batch padding and the lane padding of the output features.
    return out_padded[:batch, :out_features]


def dnn_forward_ref(x, weights, biases):
    """Pure-JAX reference of DNN.forward for correctness checking."""
    num_linear = len(weights)
    h = x
    for i in range(num_linear):
        h = h @ weights[i] + biases[i]
        if i == 0:
            h = jnp.tanh(h)
        elif i < num_linear - 1:
            h = jax.nn.relu(h)
    return h


def init_params(key, layers):
    """PyTorch Linear-style uniform +-1/sqrt(fan_in) init.

    Returns weights in (in, out) layout and biases as 1-D vectors.
    """
    weights, biases = [], []
    for fan_in, fan_out in zip(layers[:-1], layers[1:]):
        key, kw, kb = jax.random.split(key, 3)
        bound = 1.0 / jnp.sqrt(jnp.float32(fan_in))
        w = jax.random.uniform(kw, (fan_in, fan_out), jnp.float32, -bound, bound)
        b = jax.random.uniform(kb, (fan_out,), jnp.float32, -bound, bound)
        weights.append(w)
        biases.append(b)
    return weights, biases


if __name__ == "__main__":
    # DNN(layers=[8, 32, 32, 4]):
    #   input_layer: Linear(8, 32)  -> tanh
    #   hidden_layers[0]: Linear(32, 32) -> relu
    #   output_layer: Linear(32, 4)
    layers = [8, 32, 32, 4]

    key = jax.random.PRNGKey(0)
    key, kparam = jax.random.split(key)
    weights, biases = init_params(kparam, layers)

    # Small case (single grid step) and a larger case exercising the
    # batch-tiled grid (multiple "parallel" steps).
    for batch, tile in ((16, 256), (512, 128)):
        key, kx = jax.random.split(key)
        x = jax.random.normal(kx, (batch, layers[0]), jnp.float32)

        out = dnn_forward_pallas(x, weights, biases, batch_tile=tile)
        out = jax.block_until_ready(out)

        ref = dnn_forward_ref(x, weights, biases)
        assert out.shape == (batch, layers[-1])
        assert jnp.allclose(out, ref, atol=1e-5, rtol=1e-5), (
            f"batch={batch}: max abs err {jnp.max(jnp.abs(out - ref))}"
        )

    print("KERNEL_OK")
</pallas_src>

<mosaic_0001>
module attributes {stable_mosaic.version = 11 : i64} {
  func.func @_mlp_kernel(%arg0: i32, %arg1: memref<16x128xf32, #tpu.memory_space<vmem>>, %arg2: memref<128x128xf32, #tpu.memory_space<vmem>>, %arg3: memref<1x128xf32, #tpu.memory_space<vmem>>, %arg4: memref<128x128xf32, #tpu.memory_space<vmem>>, %arg5: memref<1x128xf32, #tpu.memory_space<vmem>>, %arg6: memref<128x128xf32, #tpu.memory_space<vmem>>, %arg7: memref<1x128xf32, #tpu.memory_space<vmem>>, %arg8: memref<16x128xf32, #tpu.memory_space<vmem>>) attributes {dimension_semantics = [#tpu.dimension_semantics<parallel>], iteration_bounds = array<i64: 1>, scalar_prefetch = 0 : i64, scratch_operands = 0 : i64, tpu.core_type = #tpu.core_type<tc>, window_params = [{transform_indices = @transform_0, window_bounds = array<i64: 16, 128>}, {pipeline_mode = #tpu.pipeline_mode<synchronous>, transform_indices = @transform_1, window_bounds = array<i64: 128, 128>}, {pipeline_mode = #tpu.pipeline_mode<synchronous>, transform_indices = @transform_2, window_bounds = array<i64: 1, 128>}, {pipeline_mode = #tpu.pipeline_mode<synchronous>, transform_indices = @transform_3, window_bounds = array<i64: 128, 128>}, {pipeline_mode = #tpu.pipeline_mode<synchronous>, transform_indices = @transform_4, window_bounds = array<i64: 1, 128>}, {pipeline_mode = #tpu.pipeline_mode<synchronous>, transform_indices = @transform_5, window_bounds = array<i64: 128, 128>}, {pipeline_mode = #tpu.pipeline_mode<synchronous>, transform_indices = @transform_6, window_bounds = array<i64: 1, 128>}, {transform_indices = @transform_7, window_bounds = array<i64: 16, 128>}]} {
    %c0 = arith.constant 0 : index
    %c0_0 = arith.constant 0 : index
    %0 = vector.load %arg1[%c0, %c0_0] : memref<16x128xf32, #tpu.memory_space<vmem>>, vector<16x128xf32>
    %c0_1 = arith.constant 0 : index
    %c0_2 = arith.constant 0 : index
    %1 = vector.load %arg2[%c0_1, %c0_2] : memref<128x128xf32, #tpu.memory_space<vmem>>, vector<128x128xf32>
    %c0_3 = arith.constant 0 : index
    %c0_4 = arith.constant 0 : index
    %2 = vector.load %arg3[%c0_3, %c0_4] : memref<1x128xf32, #tpu.memory_space<vmem>>, vector<1x128xf32>
    %cst = arith.constant dense<0.000000e+00> : vector<16x128xf32>
    %3 = tpu.matmul %0, %1, %cst {dimension_numbers = #tpu.dot_dimension_numbers<[1], [0], [0], [1], [0, 0, 1, 1], [], []>} : vector<16x128xf32>, vector<128x128xf32>, vector<16x128xf32> -> vector<16x128xf32>
    %4 = vector.broadcast %2 : vector<1x128xf32> to vector<16x128xf32>
    %5 = arith.addf %3, %4 : vector<16x128xf32>
    %6 = math.tanh %5 : vector<16x128xf32>
    %c0_5 = arith.constant 0 : index
    %c0_6 = arith.constant 0 : index
    %7 = vector.load %arg4[%c0_5, %c0_6] : memref<128x128xf32, #tpu.memory_space<vmem>>, vector<128x128xf32>
    %c0_7 = arith.constant 0 : index
    %c0_8 = arith.constant 0 : index
    %8 = vector.load %arg5[%c0_7, %c0_8] : memref<1x128xf32, #tpu.memory_space<vmem>>, vector<1x128xf32>
    %cst_9 = arith.constant dense<0.000000e+00> : vector<16x128xf32>
    %9 = tpu.matmul %6, %7, %cst_9 {dimension_numbers = #tpu.dot_dimension_numbers<[1], [0], [0], [1], [0, 0, 1, 1], [], []>} : vector<16x128xf32>, vector<128x128xf32>, vector<16x128xf32> -> vector<16x128xf32>
    %10 = vector.broadcast %8 : vector<1x128xf32> to vector<16x128xf32>
    %11 = arith.addf %9, %10 : vector<16x128xf32>
    %cst_10 = arith.constant 0.000000e+00 : f32
    %12 = vector.broadcast %cst_10 : f32 to vector<16x128xf32>
    %13 = arith.maximumf %11, %12 : vector<16x128xf32>
    %c0_11 = arith.constant 0 : index
    %c0_12 = arith.constant 0 : index
    %14 = vector.load %arg6[%c0_11, %c0_12] : memref<128x128xf32, #tpu.memory_space<vmem>>, vector<128x128xf32>
    %c0_13 = arith.constant 0 : index
    %c0_14 = arith.constant 0 : index
    %15 = vector.load %arg7[%c0_13, %c0_14] : memref<1x128xf32, #tpu.memory_space<vmem>>, vector<1x128xf32>
    %cst_15 = arith.constant dense<0.000000e+00> : vector<16x128xf32>
    %16 = tpu.matmul %13, %14, %cst_15 {dimension_numbers = #tpu.dot_dimension_numbers<[1], [0], [0], [1], [0, 0, 1, 1], [], []>} : vector<16x128xf32>, vector<128x128xf32>, vector<16x128xf32> -> vector<16x128xf32>
    %17 = vector.broadcast %15 : vector<1x128xf32> to vector<16x128xf32>
    %18 = arith.addf %16, %17 : vector<16x128xf32>
    %c0_16 = arith.constant 0 : index
    %c0_17 = arith.constant 0 : index
    %19 = vector.load %arg8[%c0_16, %c0_17] : memref<16x128xf32, #tpu.memory_space<vmem>>, vector<16x128xf32>
    tpu.vector_store %arg8[%c0_16, %c0_17], %18 {strides = array<i32>} : memref<16x128xf32, #tpu.memory_space<vmem>>, vector<16x128xf32>,
    return
  }
  func.func @transform_0(%arg0: i32) -> (i32, i32) {
    %c0_i32 = arith.constant 0 : i32
    %c0_i32_0 = arith.constant 0 : i32
    return %arg0, %c0_i32 : i32, i32
  }
  func.func @transform_1(%arg0: i32) -> (i32, i32) {
    %c0_i32 = arith.constant 0 : i32
    %c0_i32_0 = arith.constant 0 : i32
    %c0_i32_1 = arith.constant 0 : i32
    return %c0_i32, %c0_i32_0 : i32, i32
  }
  func.func @transform_2(%arg0: i32) -> (i32, i32) {
    %c0_i32 = arith.constant 0 : i32
    %c0_i32_0 = arith.constant 0 : i32
    %c0_i32_1 = arith.constant 0 : i32
    return %c0_i32, %c0_i32_0 : i32, i32
  }
  func.func @transform_3(%arg0: i32) -> (i32, i32) {
    %c0_i32 = arith.constant 0 : i32
    %c0_i32_0 = arith.constant 0 : i32
    %c0_i32_1 = arith.constant 0 : i32
    return %c0_i32, %c0_i32_0 : i32, i32
  }
  func.func @transform_4(%arg0: i32) -> (i32, i32) {
    %c0_i32 = arith.constant 0 : i32
    %c0_i32_0 = arith.constant 0 : i32
    %c0_i32_1 = arith.constant 0 : i32
    return %c0_i32, %c0_i32_0 : i32, i32
  }
  func.func @transform_5(%arg0: i32) -> (i32, i32) {
    %c0_i32 = arith.constant 0 : i32
    %c0_i32_0 = arith.constant 0 : i32
    %c0_i32_1 = arith.constant 0 : i32
    return %c0_i32, %c0_i32_0 : i32, i32
  }
  func.func @transform_6(%arg0: i32) -> (i32, i32) {
    %c0_i32 = arith.constant 0 : i32
    %c0_i32_0 = arith.constant 0 : i32
    %c0_i32_1 = arith.constant 0 : i32
    return %c0_i32, %c0_i32_0 : i32, i32
  }
  func.func @transform_7(%arg0: i32) -> (i32, i32) {
    %c0_i32 = arith.constant 0 : i32
    %c0_i32_0 = arith.constant 0 : i32
    return %arg0, %c0_i32 : i32, i32
  }
}

</mosaic_0001>

<bundles_post_ra>
// kernel: tpu_custom_call.1
= control target key start
LH: loop header
LB: loop body
LE: loop exit
PB: predicated region body
PF: predicated region fallthrough
CT: control target
= control target key end

     0   :  { %12 = vsyncpa [#allocation3], 0  ;;  %s935_s0 = inlined_call_operand.hbm [shape: f32[16,128], index: 0, kind: input, shape index: {}]   ;;  %s936_s1 = inlined_call_operand.hbm [shape: f32[128,128], index: 1, kind: input, shape index: {}]   ;;  %s937_s2 = inlined_call_operand.vmem [shape: f32[1,128], index: 2, kind: input, shape index: {}]   ;;  %s938_s3 = inlined_call_operand.hbm [shape: f32[128,128], index: 3, kind: input, shape index: {}]   ;;  %s939_s4 = inlined_call_operand.vmem [shape: f32[1,128], index: 4, kind: input, shape index: {}]   ;;  %s940_s5 = inlined_call_operand.hbm [shape: f32[128,128], index: 5, kind: input, shape index: {}]   ;;  %s941_s6 = inlined_call_operand.vmem [shape: f32[1,128], index: 6, kind: input, shape index: {}]   ;;  %s942_s7 = inlined_call_operand.hbm [shape: f32[16,128], index: 7, kind: output, shape index: {}]  }
   0x1   :  { %13 = vsyncpa [#allocation6], 0 }
   0x2   :  { %14 = vsyncpa [#allocation9], 0 }
   0x3   :  { %15 = vsyncpa [#allocation4], 0  ;;  %s790_s24 = smov [#allocation5]   ;;  %s791_s26 = smov [#allocation2]  }
   0x4   :  { %s33_s25 = sshll.u32 %s790_s24, 4  ;;  %s21_s27 = sshll.u32 %s791_s26, 4  ;;  %s34_s25 = int_to_ptr.vmem [resolvable:$true] %s33_s25  ;;  %s837_s27 = int_to_ptr.vmem [resolvable:$true] %s21_s27 }
   0x5   :  { %s672_s30 = scalar_lea.hbm %s936_s1, 2048 }
   0x6   :  { %p673_p0 = scmp.ne.s32.totalorder %s936_s1, %s672_s30  ;;  %p676_p1 = scmp.lt.u32.totalorder %s672_s30, %s936_s1 }
   0x8   :  { %p678_p2 = pnand %p676_p1, %p673_p0 }
   0xa   :  { %681 = shalt.err (!%p678_p2)
}
   0xb   :  { %s682_s12 = scalar_lea.vmem %s34_s25, 2048  ;;  %p687_p4 = scmp.lt.s32.totalorder %s34_s25, %s34_s25 }
   0xc   :  { %p683_p3 = scmp.ne.s32.totalorder %s34_s25, %s682_s12  ;;  %p688_p5 = scmp.lt.s32.totalorder %s682_s12, %s682_s12 }
   0xe   :  { %p689_p6 = por %p688_p5, %p687_p4 }
  0x10   :  { %p690_p7 = pnand %p689_p6, %p683_p3 }
  0x12   :  { %693 = shalt.err (!%p690_p7)
}
  0x13   :  { %s792_s13 = smov 128   ;;  %s793_s14 = smov 8  }
  0x14   :  { %39 = dma.hbm_to_vmem [thread:$0]  %s936_s1, 2048, %s34_s25, [#allocation6], %s792_s13, %s792_s13, %s793_s14  }
  0x15   :  { %s694_s19 = scalar_lea.hbm %s935_s0, 256 }
  0x16   :  { %p695_p8 = scmp.ne.s32.totalorder %s935_s0, %s694_s19  ;;  %p698_p9 = scmp.lt.u32.totalorder %s694_s19, %s935_s0 }
  0x18   :  { %p700_p10 = pnand %p698_p9, %p695_p8 }
  0x1a   :  { %703 = shalt.err (!%p700_p10)
}
  0x1b   :  { %s704_s24 = scalar_lea.vmem %s837_s27, 256  ;;  %p709_p12 = scmp.lt.s32.totalorder %s837_s27, %s837_s27 }
  0x1c   :  { %p705_p11 = scmp.ne.s32.totalorder %s837_s27, %s704_s24  ;;  %p710_p13 = scmp.lt.s32.totalorder %s704_s24, %s704_s24 }
  0x1e   :  { %p711_p0 = por %p710_p13, %p709_p12 }
  0x20   :  { %p712_p1 = pnand %p711_p0, %p705_p11 }
  0x22   :  { %715 = shalt.err (!%p712_p1)
}
  0x23   :  { %27 = dma.hbm_to_vmem [thread:$0]  %s935_s0, 256, %s837_s27, [#allocation3], %s792_s13, %s792_s13, %s793_s14  }
  0x24   :  { %s794_s26 = smov [#allocation7]   ;;  %s795_s29 = smov [#allocation8]  }
  0x25   :  { %s47_s28 = sshll.u32 %s794_s26, 4  ;;  %s61_s30 = sshll.u32 %s795_s29, 4  ;;  %s48_s28 = int_to_ptr.vmem [resolvable:$true] %s47_s28  ;;  %s874_s30 = int_to_ptr.vmem [resolvable:$true] %s61_s30 }
  0x26   :  { %s716_s10 = scalar_lea.hbm %s938_s3, 2048 }
  0x27   :  { %p717_p2 = scmp.ne.s32.totalorder %s938_s3, %s716_s10  ;;  %p720_p3 = scmp.lt.u32.totalorder %s716_s10, %s938_s3 }
  0x29   :  { %p722_p4 = pnand %p720_p3, %p717_p2 }
  0x2b   :  { %725 = shalt.err (!%p722_p4)
}
  0x2c   :  { %s726_s0 = scalar_lea.vmem %s48_s28, 2048  ;;  %p731_p6 = scmp.lt.s32.totalorder %s48_s28, %s48_s28 }
  0x2d   :  { %p727_p5 = scmp.ne.s32.totalorder %s48_s28, %s726_s0  ;;  %p732_p7 = scmp.lt.s32.totalorder %s726_s0, %s726_s0 }
  0x2f   :  { %p733_p8 = por %p732_p7, %p731_p6 }
  0x31   :  { %p734_p9 = pnand %p733_p8, %p727_p5 }
  0x33   :  { %737 = shalt.err (!%p734_p9)
}
  0x34   :  { %53 = dma.hbm_to_vmem [thread:$0]  %s938_s3, 2048, %s48_s28, [#allocation6], %s792_s13, %s792_s13, %s793_s14  }
  0x35   :  { %s738_s20 = scalar_lea.hbm %s940_s5, 2048 }
  0x36   :  { %p739_p10 = scmp.ne.s32.totalorder %s940_s5, %s738_s20  ;;  %p742_p11 = scmp.lt.u32.totalorder %s738_s20, %s940_s5 }
  0x38   :  { %p744_p12 = pnand %p742_p11, %p739_p10 }
  0x3a   :  { %747 = shalt.err (!%p744_p12)
}
  0x3b   :  { %s748_s1 = scalar_lea.vmem %s874_s30, 2048  ;;  %p753_p0 = scmp.lt.s32.totalorder %s874_s30, %s874_s30 }
  0x3c   :  { %p749_p13 = scmp.ne.s32.totalorder %s874_s30, %s748_s1  ;;  %p754_p1 = scmp.lt.s32.totalorder %s748_s1, %s748_s1 }
  0x3e   :  { %p755_p2 = por %p754_p1, %p753_p0 }
  0x40   :  { %p756_p3 = pnand %p755_p2, %p749_p13 }
  0x42   :  { %759 = shalt.err (!%p756_p3)
}
  0x43   :  { %67 = dma.hbm_to_vmem [thread:$0]  %s940_s5, 2048, %s874_s30, [#allocation9], %s792_s13, %s792_s13, %s793_s14  }
  0x44   :  { %782 = dma.done.wait [#allocation3], 256  }
  0x45   :  { %783 = vsyncadd [#allocation3], 4294967040 }
  0x46   :  { %784 = dma.done.wait [#allocation6], 4096  }
  0x47   :  { %785 = vsyncadd [#allocation6], 4294963200 }
  0x48   :  { %786 = dma.done.wait [#allocation9], 2048  }
  0x49   :  { %787 = vsyncadd [#allocation9], 4294965248  ;;  %v84_v0 = vld [vmem:[#allocation5] sm:$0xff]  ;;  %v85_v1 = vld [vmem:[#allocation5 + $0x8] sm:$0xff]  ;;  %s796_s8 = smov [#allocation10]  }
  0x4a   :  { %v86_v2 = vld [vmem:[#allocation5 + $0x10] sm:$0xff]  ;;  %v565_v3 = vpack.c.bf16 %v85_v1, %v84_v0  ;;  %v87_v4 = vld [vmem:[#allocation5 + $0x18] sm:$0xff]  ;;  %v88_v6 = vld [vmem:[#allocation5 + $0x20] sm:$0xff]  ;;  %s389_s9 = sshll.u32 %s796_s8, 4  ;;  %s390_s9 = int_to_ptr.vmem [resolvable:$true] %s389_s9 }
  0x4b   :  { %v569_v5 = vpack.c.bf16 %v87_v4, %v86_v2  ;;  %v89_v7 = vld [vmem:[#allocation5 + $0x28] sm:$0xff]  ;;  %v90_v9 = vld [vmem:[#allocation5 + $0x30] sm:$0xff]  ;;  %v91_v10 = vld [vmem:[#allocation5 + $0x38] sm:$0xff]  ;;  %p765_p5 = scmp.lt.s32.totalorder %s390_s9, %s390_s9 }
  0x4c   :  { %566 = vmatprep.subr.bf16.mxu0 %v565_v3  ;;  %v573_v8 = vpack.c.bf16 %v89_v7, %v88_v6  ;;  %v82_v11 = vld [vmem:[#allocation2] sm:$0xff]  ;;  %v184_v12 = vld [vmem:[#allocation7] sm:$0xff]  ;;  %v185_v13 = vld [vmem:[#allocation7 + $0x8] sm:$0xff]  ;;  %v577_v20 = vpack.c.bf16 %v91_v10, %v90_v9 }
  0x4d   :  { %568 = vmatpush3.bf16.msra.mxu0 %v565_v3  ;;  %492 = vmatprep.mubr.f32.mxu0 %v82_v11  ;;  %v186_v14 = vld [vmem:[#allocation7 + $0x10] sm:$0xff]  ;;  %v597_v15 = vpack.c.bf16 %v185_v13, %v184_v12  ;;  %v187_v16 = vld [vmem:[#allocation7 + $0x18] sm:$0xff]  ;;  %v188_v18 = vld [vmem:[#allocation7 + $0x20] sm:$0xff] }
  0x4e   :  { %570 = vmatprep.subr.bf16.mxu0 %v569_v5  ;;  %v601_v17 = vpack.c.bf16 %v187_v16, %v186_v14  ;;  %v189_v19 = vld [vmem:[#allocation7 + $0x28] sm:$0xff]  ;;  %v92_v21 = vld [vmem:[#allocation5 + $0x40] sm:$0xff]  ;;  %v190_v24 = vld [vmem:[#allocation7 + $0x30] sm:$0xff] }
  0x4f   :  { %598 = vmatprep.subr.bf16.mxu1 %v597_v15  ;;  %v93_v22 = vld [vmem:[#allocation5 + $0x48] sm:$0xff]  ;;  %v605_v23 = vpack.c.bf16 %v189_v19, %v188_v18  ;;  %v191_v25 = vld [vmem:[#allocation7 + $0x38] sm:$0xff]  ;;  %v94_v27 = vld [vmem:[#allocation5 + $0x50] sm:$0xff] }
  0x50   :  { %600 = vmatpush3.bf16.msra.mxu1 %v597_v15  ;;  %v581_v26 = vpack.c.bf16 %v93_v22, %v92_v21  ;;  %v95_v28 = vld [vmem:[#allocation5 + $0x58] sm:$0xff]  ;;  %v609_v29 = vpack.c.bf16 %v191_v25, %v190_v24  ;;  %v96_v31 = vld [vmem:[#allocation5 + $0x60] sm:$0xff]  ;;  %v97_v32 = vld [vmem:[#allocation5 + $0x68] sm:$0xff] }
  0x51   :  { %572 = vmatpush3.bf16.msra.mxu0 %v569_v5  ;;  %602 = vmatprep.subr.bf16.mxu1 %v601_v17  ;;  %v585_v30 = vpack.c.bf16 %v95_v28, %v94_v27  ;;  %v589_v33 = vpack.c.bf16 %v97_v32, %v96_v31  ;;  %v98_v34 = vld [vmem:[#allocation5 + $0x70] sm:$0xff]  ;;  %v99_v35 = vld [vmem:[#allocation5 + $0x78] sm:$0xff]  ;;  %v192_v38 = vld [vmem:[#allocation7 + $0x40] sm:$0xff] }
  0x52   :  { %574 = vmatprep.subr.bf16.mxu0 %v573_v8  ;;  %v593_v36 = vpack.c.bf16 %v99_v35, %v98_v34  ;;  %v83_v37 = vld [vmem:[#allocation2 + $0x8] sm:$0xff]  ;;  %v193_v39 = vld [vmem:[#allocation7 + $0x48] sm:$0xff]  ;;  %v194_v41 = vld [vmem:[#allocation7 + $0x50] sm:$0xff] }
  0x53   :  { %v613_v40 = vpack.c.bf16 %v193_v39, %v192_v38  ;;  %v195_v42 = vld [vmem:[#allocation7 + $0x58] sm:$0xff]  ;;  %v196_v44 = vld [vmem:[#allocation7 + $0x60] sm:$0xff]  ;;  %v197_v45 = vld [vmem:[#allocation7 + $0x68] sm:$0xff] }
  0x54   :  { %604 = vmatpush3.bf16.msra.mxu1 %v601_v17  ;;  %v617_v43 = vpack.c.bf16 %v195_v42, %v194_v41  ;;  %v198_v46 = vld [vmem:[#allocation7 + $0x70] sm:$0xff]  ;;  %v621_v47 = vpack.c.bf16 %v197_v45, %v196_v44  ;;  %v199_v48 = vld [vmem:[#allocation7 + $0x78] sm:$0xff]  ;;  %v284_v50 = vld [vmem:[#allocation8] sm:$0xff] }
  0x55   :  { %576 = vmatpush3.bf16.msra.mxu0 %v573_v8  ;;  %606 = vmatprep.subr.bf16.mxu1 %v605_v23  ;;  %v625_v49 = vpack.c.bf16 %v199_v48, %v198_v46  ;;  %v285_v51 = vld [vmem:[#allocation8 + $0x8] sm:$0xff]  ;;  %v286_v52 = vld [vmem:[#allocation8 + $0x10] sm:$0xff]  ;;  %v287_v54 = vld [vmem:[#allocation8 + $0x18] sm:$0xff] }
  0x56   :  { %578 = vmatprep.subr.bf16.mxu0 %v577_v20  ;;  %v629_v53 = vpack.c.bf16 %v285_v51, %v284_v50  ;;  %v633_v55 = vpack.c.bf16 %v287_v54, %v286_v52  ;;  %v288_v56 = vld [vmem:[#allocation8 + $0x20] sm:$0xff]  ;;  %v289_v57 = vld [vmem:[#allocation8 + $0x28] sm:$0xff]  ;;  %v290_v59 = vld [vmem:[#allocation8 + $0x30] sm:$0xff] }
  0x57   :  { %v637_v58 = vpack.c.bf16 %v289_v57, %v288_v56  ;;  %v291_v60 = vld [vmem:[#allocation8 + $0x38] sm:$0xff]  ;;  %v292_v62 = vld [vmem:[#allocation8 + $0x40] sm:$0xff]  ;;  %v293_v63 = vld [vmem:[#allocation8 + $0x48] sm:$0xff] }
  0x58   :  { %608 = vmatpush3.bf16.msra.mxu1 %v605_v23  ;;  %v641_v61 = vpack.c.bf16 %v291_v60, %v290_v59  ;;  %v645_v0 = vpack.c.bf16 %v293_v63, %v292_v62  ;;  %v294_v1 = vld [vmem:[#allocation8 + $0x50] sm:$0xff]  ;;  %v295_v2 = vld [vmem:[#allocation8 + $0x58] sm:$0xff]  ;;  %v296_v4 = vld [vmem:[#allocation8 + $0x60] sm:$0xff] }
  0x59   :  { %580 = vmatpush3.bf16.msra.mxu0 %v577_v20  ;;  %610 = vmatprep.subr.bf16.mxu1 %v609_v29  ;;  %v649_v3 = vpack.c.bf16 %v295_v2, %v294_v1  ;;  %v297_v5 = vld [vmem:[#allocation8 + $0x68] sm:$0xff]  ;;  %v403_v7 = vld [vmem:[%s937_s2] ss:$0 sm:$0xff]  ;;  %v299_v15 = vld [vmem:[#allocation8 + $0x78] sm:$0xff] }
  0x5a   :  { %582 = vmatprep.subr.bf16.mxu0 %v581_v26  ;;  %v653_v6 = vpack.c.bf16 %v297_v5, %v296_v4  ;;  %v298_v14 = vld [vmem:[#allocation8 + $0x70] sm:$0xff] }
  0x5b   :  { %v657_v16 = vpack.c.bf16 %v299_v15, %v298_v14  ;;  %v404_v17 = vld [vmem:[%s939_s4] ss:$0 sm:$0xff]  ;;  %s760_s4 = scalar_lea.vmem %s390_s9, 256 }
  0x5c   :  { %612 = vmatpush3.bf16.msra.mxu1 %v609_v29  ;;  %v405_v24 = vld [vmem:[%s941_s6] ss:$0 sm:$0xff]  ;;  %p761_p4 = scmp.ne.s32.totalorder %s390_s9, %s760_s4  ;;  %p766_p6 = scmp.lt.s32.totalorder %s760_s4, %s760_s4 }
  0x5d   :  { %584 = vmatpush3.bf16.msra.mxu0 %v581_v26  ;;  %614 = vmatprep.subr.bf16.mxu1 %v613_v40 }
  0x5e   :  { %586 = vmatprep.subr.bf16.mxu0 %v585_v30  ;;  %p767_p7 = por %p766_p6, %p765_p5 }
  0x60   :  { %616 = vmatpush3.bf16.msra.mxu1 %v613_v40  ;;  %p768_p8 = pnand %p767_p7, %p761_p4 }
  0x61   :  { %588 = vmatpush3.bf16.msra.mxu0 %v585_v30  ;;  %618 = vmatprep.subr.bf16.mxu1 %v617_v43 }
  0x62   :  { %590 = vmatprep.subr.bf16.mxu0 %v589_v33 }
  0x64   :  { %620 = vmatpush3.bf16.msra.mxu1 %v617_v43 }
  0x65   :  { %592 = vmatpush3.bf16.msra.mxu0 %v589_v33  ;;  %622 = vmatprep.subr.bf16.mxu1 %v621_v47 }
  0x66   :  { %594 = vmatprep.subr.bf16.mxu0 %v593_v36 }
  0x68   :  { %624 = vmatpush3.bf16.msra.mxu1 %v621_v47 }
  0x69   :  { %596 = vmatpush3.bf16.msra.mxu0 %v593_v36  ;;  %626 = vmatprep.subr.bf16.mxu1 %v625_v49 }
  0x6a   :  { %630 = vmatprep.subr.bf16.mxu0 %v629_v53 }
  0x6c   :  { %493 = vmatmul.mubr.f32.vlgmr.msra.gmra.mrb[0].mxu0 %v83_v37  ;;  %628 = vmatpush3.bf16.msra.mxu1 %v625_v49 }
  0x6d   :  { %632 = vmatpush3.bf16.msra.mxu0 %v629_v53 }
  0x6e   :  { %634 = vmatprep.subr.bf16.mxu0 %v633_v55 }
  0x71   :  { %636 = vmatpush3.bf16.msra.mxu0 %v633_v55 }
  0x72   :  { %638 = vmatprep.subr.bf16.mxu0 %v637_v58 }
  0x75   :  { %640 = vmatpush3.bf16.msra.mxu0 %v637_v58 }
  0x76   :  { %642 = vmatprep.subr.bf16.mxu0 %v641_v61 }
  0x79   :  { %644 = vmatpush3.bf16.msra.mxu0 %v641_v61 }
  0x7a   :  { %646 = vmatprep.subr.bf16.mxu0 %v645_v0 }
  0x7d   :  { %648 = vmatpush3.bf16.msra.mxu0 %v645_v0 }
  0x7e   :  { %650 = vmatprep.subr.bf16.mxu0 %v649_v3 }
  0x81   :  { %652 = vmatpush3.bf16.msra.mxu0 %v649_v3 }
  0x82   :  { %654 = vmatprep.subr.bf16.mxu0 %v653_v6 }
  0x85   :  { %656 = vmatpush3.bf16.msra.mxu0 %v653_v6 }
  0x86   :  { %658 = vmatprep.subr.bf16.mxu0 %v657_v16 }
  0x89   :  { %660 = vmatpush3.bf16.msra.mxu0 %v657_v16 }
 0x13f   :  { %v494_v8 = vpop.f32.mrb[0].mxu0 }
 0x140   :  { %v179_v9 = vadd.f32 %v494_v8, %v403_v7  ;;  %v173_v10 = vpop.f32.mrb[1].mxu0 }
 0x141   :  { %v174_v11 = vadd.f32 %v403_v7, %v173_v10 }
 0x143   :  { %668 = vtanh.f32 %v174_v11 }
 0x144   :  { %670 = vtanh.f32 %v179_v9 }
 0x14d   :  { %v669_v12 = vpop.eup %668 }
 0x14e   :  { %v671_v13 = vpop.eup %670  ;;  %527 = vmatprep.mubr.f32.mxu1 %v669_v12 }
 0x14f   :  { %528 = vmatmul.mubr.f32.vlgmr.msra.gmra.mrb[0].mxu1 %v671_v13 }
 0x222   :  { %v529_v18 = vpop.f32.mrb[0].mxu1 }
 0x223   :  { %v279_v19 = vadd.f32 %v529_v18, %v404_v17  ;;  %v273_v20 = vpop.f32.mrb[1].mxu1 }
 0x224   :  { %v274_v21 = vadd.f32 %v404_v17, %v273_v20 }
 0x225   :  { %v283_v23 = vmax.f32 %v279_v19, 0.0 }
 0x226   :  { %v282_v22 = vmax.f32 %v274_v21, 0.0 }
 0x228   :  { %562 = vmatprep.mubr.f32.mxu0 %v282_v22 }
 0x229   :  { %563 = vmatmul.mubr.f32.vlgmr.msra.gmra.mrb[2].mxu0 %v283_v23 }
 0x2fc   :  { %v564_v25 = vpop.f32.mrb[2].mxu0 }
 0x2fd   :  { %v379_v26 = vadd.f32 %v564_v25, %v405_v24  ;;  %v373_v27 = vpop.f32.mrb[3].mxu0 }
 0x2fe   :  { %v374_v28 = vadd.f32 %v405_v24, %v373_v27 }
 0x2ff   :  { %383 = vst [vmem:[#allocation10 + $0x8] sm:$0xff] %v379_v26 }
 0x300   :  { %382 = vst [vmem:[#allocation10] sm:$0xff] %v374_v28 }
 0x301   :  { %771 = shalt.err (!%p768_p8)
}
 0x302   :  { %s772_s6 = scalar_lea.hbm %s942_s7, 256 }
 0x303   :  { %p773_p9 = scmp.ne.s32.totalorder %s942_s7, %s772_s6  ;;  %p776_p10 = scmp.lt.u32.totalorder %s772_s6, %s942_s7 }
 0x305   :  { %p778_p11 = pnand %p776_p10, %p773_p9 }
 0x307   :  { %781 = shalt.err (!%p778_p11)
}
 0x308   :  { %395 = dma.vmem_to_hbm [thread:$0]  %s390_s9, 256, %s942_s7, [#allocation4], %s792_s13, %s792_s13, %s793_s14  }
 0x309   :  { %788 = dma.done.wait [#allocation4], 256  }
 0x30a   :  { %789 = vsyncadd [#allocation4], 4294967040 }
 0x30b   :  { %399 = vsyncpa [#allocation3], 1 }
 0x30c   :  { %400 = vsyncpa [#allocation6], 1 }
 0x30d   :  { %401 = vsyncpa [#allocation9], 1 }
 0x30e   :  { %402 = vsyncpa [#allocation4], 1 }

</bundles_post_ra>
